<compile_context>
chip_gen: v7x
topology: tpu7x:2x2x1
jax: 0.10.0
libtpu: 0.0.40
codegen_flags: <defaults>
</compile_context>

<pallas_src>
import functools

import jax
import jax.numpy as jnp
from jax.experimental import pallas as pl
from jax.experimental.pallas import tpu as pltpu

_LANE = 128
_SUBLANE = 8


def _round_up(n, m):
    return (n + m - 1) // m * m


def _cdiv(a, b):
    return -(-a // b)


def _pad2(a, rows, cols):
    return jnp.pad(a, ((0, rows - a.shape[0]), (0, cols - a.shape[1])))


def _dqn_kernel(x_ref, w1_ref, b1_ref, w2_ref, b2_ref, w3_ref, b3_ref, o_ref):
    # MXU matmuls in the weights' storage dtype (f32 or bf16), f32 accumulation.
    # Bias-add / ReLU stay in f32.
    x = x_ref[...].astype(w1_ref.dtype)          # no-op when dtypes already match
    h = jnp.dot(x, w1_ref[...], preferred_element_type=jnp.float32)
    h = jnp.maximum(h + b1_ref[...], 0.0)

    h = jnp.dot(h.astype(w2_ref.dtype), w2_ref[...],
                preferred_element_type=jnp.float32)
    h = jnp.maximum(h + b2_ref[...], 0.0)

    # Third matmul is UNPADDED along the action dim: only the real A columns
    # are computed and stored, so the HBM writeback is A*4 bytes/row.
    h = jnp.dot(h.astype(w3_ref.dtype), w3_ref[...],
                preferred_element_type=jnp.float32)
    o_ref[...] = (h + b3_ref[...]).astype(o_ref.dtype)


def prepare_params(params, matmul_dtype=jnp.bfloat16):
    """Pad/cast the weights ONCE (hoisted out of the per-call forward).

    Hidden dim is zero-padded to a multiple of 128 lanes (zero weight cols ->
    zero activations through ReLU -> zero contribution downstream).  The
    action dim of w3/b3 is left unpadded so the kernel's output store and HBM
    writeback are exactly (B, A).
    """
    w1, b1, w2, b2, w3, b3 = (params["w1"], params["b1"], params["w2"],
                              params["b2"], params["w3"], params["b3"])
    S, H = w1.shape
    A = w3.shape[1]
    Hp = _round_up(H, _LANE)
    return {
        "w1": _pad2(w1.astype(matmul_dtype), S, Hp),
        "b1": _pad2(jnp.reshape(b1, (1, -1)).astype(jnp.float32), 1, Hp),
        "w2": _pad2(w2.astype(matmul_dtype), Hp, Hp),
        "b2": _pad2(jnp.reshape(b2, (1, -1)).astype(jnp.float32), 1, Hp),
        "w3": _pad2(w3.astype(matmul_dtype), Hp, A),
        "b3": jnp.reshape(b3, (1, -1)).astype(jnp.float32),
    }


@functools.partial(jax.jit, static_argnames=("block_b", "vmem_limit_bytes"))
def deep_q_network_forward(x, padded_params, *, block_b=8192,
                           vmem_limit_bytes=40 * 1024 * 1024):
    """x: (B, dim_states), any float dtype. padded_params: from prepare_params."""
    w1p, b1p = padded_params["w1"], padded_params["b1"]
    w2p, b2p = padded_params["w2"], padded_params["b2"]
    w3p, b3p = padded_params["w3"], padded_params["b3"]
    B, S = x.shape
    Hp = w1p.shape[1]
    A = w3p.shape[1]

    # --- batch tiling ---------------------------------------------------
    # Large tiles amortize the ~0.35us/grid-step overhead; when one tile would
    # cover the whole batch we split it in two so the "parallel" grid axis can
    # shard across both TensorCores on v7x (megacore on v5e/v6e).
    Bceil = _round_up(B, _SUBLANE)
    n_steps = max(1, _cdiv(Bceil, max(_round_up(block_b, _SUBLANE), _SUBLANE)))
    if n_steps == 1 and Bceil % (2 * _SUBLANE) == 0:
        n_steps = 2
    eff_bb = _round_up(_cdiv(Bceil, n_steps), _SUBLANE)
    Bp = _round_up(B, eff_bb)
    xp = x if Bp == B else jnp.pad(x, ((0, Bp - B), (0, 0)))
    grid = (Bp // eff_bb,)

    w_bytes = sum(int(w.size) * w.dtype.itemsize for w in (w1p, w2p, w3p))
    b_bytes = int(b1p.size + b2p.size + b3p.size) * 4
    cost = pl.CostEstimate(
        flops=2 * Bp * (S * Hp + Hp * Hp + Hp * A),
        transcendentals=0,
        bytes_accessed=int(xp.size * xp.dtype.itemsize) + int(Bp * A * 4)
                       + w_bytes + b_bytes,
    )

    out = pl.pallas_call(
        _dqn_kernel,
        out_shape=jax.ShapeDtypeStruct((Bp, A), jnp.float32),
        grid_spec=pltpu.PrefetchScalarGridSpec(
            num_scalar_prefetch=0,
            grid=grid,
            in_specs=[
                pl.BlockSpec((eff_bb, S), lambda i: (i, 0)),   # x: batch-tiled
                pl.BlockSpec((S, Hp), lambda i: (0, 0)),       # weights/biases:
                pl.BlockSpec((1, Hp), lambda i: (0, 0)),       # constant index_map
                pl.BlockSpec((Hp, Hp), lambda i: (0, 0)),      # -> VMEM-resident,
                pl.BlockSpec((1, Hp), lambda i: (0, 0)),       #    never re-DMA'd
                pl.BlockSpec((Hp, A), lambda i: (0, 0)),
                pl.BlockSpec((1, A), lambda i: (0, 0)),
            ],
            out_specs=pl.BlockSpec((eff_bb, A), lambda i: (i, 0)),
        ),
        compiler_params=pltpu.CompilerParams(
            dimension_semantics=("parallel",),        # megacore / 2-TC sharding
            vmem_limit_bytes=vmem_limit_bytes,        # <=40 MiB: safe on v7x's
        ),                                            # 64 MiB physical VMEM
        cost_estimate=cost,
    )(xp, w1p, b1p, w2p, b2p, w3p, b3p)

    # Only batch padding (if any) needs trimming; the action dim is unpadded.
    return out if Bp == B else out[:B]


def init_params(key, dim_states, dim_actions, hidden=64):
    """Deterministic init mimicking PyTorch nn.Linear (uniform +/- 1/sqrt(fan_in))."""
    ks = jax.random.split(key, 6)

    def linear(kw, kb, fan_in, fan_out):
        bound = 1.0 / jnp.sqrt(jnp.float32(fan_in))
        w = jax.random.uniform(kw, (fan_in, fan_out), jnp.float32, -bound, bound)
        b = jax.random.uniform(kb, (1, fan_out), jnp.float32, -bound, bound)
        return w, b

    w1, b1 = linear(ks[0], ks[1], dim_states, hidden)
    w2, b2 = linear(ks[2], ks[3], hidden, hidden)
    w3, b3 = linear(ks[4], ks[5], hidden, dim_actions)
    return {"w1": w1, "b1": b1, "w2": w2, "b2": b2, "w3": w3, "b3": b3}


def _reference_forward(x, p):
    h = jnp.maximum(x @ p["w1"] + p["b1"], 0.0)
    h = jnp.maximum(h @ p["w2"] + p["b2"], 0.0)
    return h @ p["w3"] + p["b3"]


if __name__ == "__main__":
    key = jax.random.PRNGKey(0)
    k_x, k_p = jax.random.split(key)

    batch = 8
    dim_states = 16
    dim_actions = 4

    x = jax.random.normal(k_x, (batch, dim_states), jnp.float32)
    params = init_params(k_p, dim_states, dim_actions)
    ref = _reference_forward(x, params)

    # Exact path: f32 MXU operands, tight tolerance.
    p_f32 = prepare_params(params, matmul_dtype=jnp.float32)
    out_f32 = jax.block_until_ready(deep_q_network_forward(x, p_f32))
    assert out_f32.shape == (batch, dim_actions)
    assert jnp.allclose(out_f32, ref, atol=1e-5, rtol=1e-5)

    # Fast path: bf16 weight storage / MXU operands, f32 accumulation.
    p_bf16 = prepare_params(params, matmul_dtype=jnp.bfloat16)
    out_bf16 = jax.block_until_ready(deep_q_network_forward(x, p_bf16))
    assert out_bf16.shape == (batch, dim_actions)
    assert jnp.allclose(out_bf16, ref, atol=5e-2, rtol=5e-2)

    print("KERNEL_OK")
</pallas_src>

<mosaic_0001>
module attributes {stable_mosaic.version = 11 : i64} {
  func.func @_dqn_kernel(%arg0: i32, %arg1: memref<8x16xf32, #tpu.memory_space<vmem>>, %arg2: memref<16x128xf32, #tpu.memory_space<vmem>>, %arg3: memref<1x128xf32, #tpu.memory_space<vmem>>, %arg4: memref<128x128xf32, #tpu.memory_space<vmem>>, %arg5: memref<1x128xf32, #tpu.memory_space<vmem>>, %arg6: memref<128x4xf32, #tpu.memory_space<vmem>>, %arg7: memref<1x4xf32, #tpu.memory_space<vmem>>, %arg8: memref<8x4xf32, #tpu.memory_space<vmem>>) attributes {dimension_semantics = [#tpu.dimension_semantics<parallel>], iteration_bounds = array<i64: 1>, scalar_prefetch = 0 : i64, scratch_operands = 0 : i64, tpu.core_type = #tpu.core_type<tc>, window_params = [{transform_indices = @transform_0, window_bounds = array<i64: 8, 16>}, {pipeline_mode = #tpu.pipeline_mode<synchronous>, transform_indices = @transform_1, window_bounds = array<i64: 16, 128>}, {pipeline_mode = #tpu.pipeline_mode<synchronous>, transform_indices = @transform_2, window_bounds = array<i64: 1, 128>}, {pipeline_mode = #tpu.pipeline_mode<synchronous>, transform_indices = @transform_3, window_bounds = array<i64: 128, 128>}, {pipeline_mode = #tpu.pipeline_mode<synchronous>, transform_indices = @transform_4, window_bounds = array<i64: 1, 128>}, {pipeline_mode = #tpu.pipeline_mode<synchronous>, transform_indices = @transform_5, window_bounds = array<i64: 128, 4>}, {pipeline_mode = #tpu.pipeline_mode<synchronous>, transform_indices = @transform_6, window_bounds = array<i64: 1, 4>}, {transform_indices = @transform_7, window_bounds = array<i64: 8, 4>}]} {
    %c0 = arith.constant 0 : index
    %c0_0 = arith.constant 0 : index
    %0 = vector.load %arg1[%c0, %c0_0] : memref<8x16xf32, #tpu.memory_space<vmem>>, vector<8x16xf32>
    %c0_1 = arith.constant 0 : index
    %c0_2 = arith.constant 0 : index
    %1 = vector.load %arg2[%c0_1, %c0_2] : memref<16x128xf32, #tpu.memory_space<vmem>>, vector<16x128xf32>
    %cst = arith.constant dense<0.000000e+00> : vector<8x128xf32>
    %2 = tpu.matmul %0, %1, %cst {dimension_numbers = #tpu.dot_dimension_numbers<[1], [0], [0], [1], [0, 0, 1, 1], [], []>} : vector<8x16xf32>, vector<16x128xf32>, vector<8x128xf32> -> vector<8x128xf32>
    %c0_3 = arith.constant 0 : index
    %c0_4 = arith.constant 0 : index
    %3 = vector.load %arg3[%c0_3, %c0_4] : memref<1x128xf32, #tpu.memory_space<vmem>>, vector<1x128xf32>
    %4 = vector.broadcast %3 : vector<1x128xf32> to vector<8x128xf32>
    %5 = arith.addf %2, %4 : vector<8x128xf32>
    %cst_5 = arith.constant 0.000000e+00 : f32
    %6 = vector.broadcast %cst_5 : f32 to vector<8x128xf32>
    %7 = arith.maximumf %5, %6 : vector<8x128xf32>
    %c0_6 = arith.constant 0 : index
    %c0_7 = arith.constant 0 : index
    %8 = vector.load %arg4[%c0_6, %c0_7] : memref<128x128xf32, #tpu.memory_space<vmem>>, vector<128x128xf32>
    %cst_8 = arith.constant dense<0.000000e+00> : vector<8x128xf32>
    %9 = tpu.matmul %7, %8, %cst_8 {dimension_numbers = #tpu.dot_dimension_numbers<[1], [0], [0], [1], [0, 0, 1, 1], [], []>} : vector<8x128xf32>, vector<128x128xf32>, vector<8x128xf32> -> vector<8x128xf32>
    %c0_9 = arith.constant 0 : index
    %c0_10 = arith.constant 0 : index
    %10 = vector.load %arg5[%c0_9, %c0_10] : memref<1x128xf32, #tpu.memory_space<vmem>>, vector<1x128xf32>
    %11 = vector.broadcast %10 : vector<1x128xf32> to vector<8x128xf32>
    %12 = arith.addf %9, %11 : vector<8x128xf32>
    %cst_11 = arith.constant 0.000000e+00 : f32
    %13 = vector.broadcast %cst_11 : f32 to vector<8x128xf32>
    %14 = arith.maximumf %12, %13 : vector<8x128xf32>
    %c0_12 = arith.constant 0 : index
    %c0_13 = arith.constant 0 : index
    %15 = vector.load %arg6[%c0_12, %c0_13] : memref<128x4xf32, #tpu.memory_space<vmem>>, vector<128x4xf32>
    %cst_14 = arith.constant dense<0.000000e+00> : vector<8x4xf32>
    %16 = tpu.matmul %14, %15, %cst_14 {dimension_numbers = #tpu.dot_dimension_numbers<[1], [0], [0], [1], [0, 0, 1, 1], [], []>} : vector<8x128xf32>, vector<128x4xf32>, vector<8x4xf32> -> vector<8x4xf32>
    %c0_15 = arith.constant 0 : index
    %c0_16 = arith.constant 0 : index
    %17 = vector.load %arg7[%c0_15, %c0_16] : memref<1x4xf32, #tpu.memory_space<vmem>>, vector<1x4xf32>
    %18 = vector.broadcast %17 : vector<1x4xf32> to vector<8x4xf32>
    %19 = arith.addf %16, %18 : vector<8x4xf32>
    %c0_17 = arith.constant 0 : index
    %c0_18 = arith.constant 0 : index
    %20 = vector.load %arg8[%c0_17, %c0_18] : memref<8x4xf32, #tpu.memory_space<vmem>>, vector<8x4xf32>
    tpu.vector_store %arg8[%c0_17, %c0_18], %19 {strides = array<i32>} : memref<8x4xf32, #tpu.memory_space<vmem>>, vector<8x4xf32>,
    return
  }
  func.func @transform_0(%arg0: i32) -> (i32, i32) {
    %c0_i32 = arith.constant 0 : i32
    %c0_i32_0 = arith.constant 0 : i32
    return %arg0, %c0_i32 : i32, i32
  }
  func.func @transform_1(%arg0: i32) -> (i32, i32) {
    %c0_i32 = arith.constant 0 : i32
    %c0_i32_0 = arith.constant 0 : i32
    %c0_i32_1 = arith.constant 0 : i32
    return %c0_i32, %c0_i32_0 : i32, i32
  }
  func.func @transform_2(%arg0: i32) -> (i32, i32) {
    %c0_i32 = arith.constant 0 : i32
    %c0_i32_0 = arith.constant 0 : i32
    %c0_i32_1 = arith.constant 0 : i32
    return %c0_i32, %c0_i32_0 : i32, i32
  }
  func.func @transform_3(%arg0: i32) -> (i32, i32) {
    %c0_i32 = arith.constant 0 : i32
    %c0_i32_0 = arith.constant 0 : i32
    %c0_i32_1 = arith.constant 0 : i32
    return %c0_i32, %c0_i32_0 : i32, i32
  }
  func.func @transform_4(%arg0: i32) -> (i32, i32) {
    %c0_i32 = arith.constant 0 : i32
    %c0_i32_0 = arith.constant 0 : i32
    %c0_i32_1 = arith.constant 0 : i32
    return %c0_i32, %c0_i32_0 : i32, i32
  }
  func.func @transform_5(%arg0: i32) -> (i32, i32) {
    %c0_i32 = arith.constant 0 : i32
    %c0_i32_0 = arith.constant 0 : i32
    %c0_i32_1 = arith.constant 0 : i32
    return %c0_i32, %c0_i32_0 : i32, i32
  }
  func.func @transform_6(%arg0: i32) -> (i32, i32) {
    %c0_i32 = arith.constant 0 : i32
    %c0_i32_0 = arith.constant 0 : i32
    %c0_i32_1 = arith.constant 0 : i32
    return %c0_i32, %c0_i32_0 : i32, i32
  }
  func.func @transform_7(%arg0: i32) -> (i32, i32) {
    %c0_i32 = arith.constant 0 : i32
    %c0_i32_0 = arith.constant 0 : i32
    return %arg0, %c0_i32 : i32, i32
  }
}

</mosaic_0001>

<bundles_post_ra>
// kernel: deep_q_network_forward.1
= control target key start
LH: loop header
LB: loop body
LE: loop exit
PB: predicated region body
PF: predicated region fallthrough
CT: control target
= control target key end

     0   :  { %12 = vsyncpa [#allocation3], 0  ;;  %s514_s24 = smov [#allocation2]   ;;  %s704_s0 = inlined_call_operand.hbm [shape: f32[8,16], index: 0, kind: input, shape index: {}]   ;;  %s705_s1 = inlined_call_operand.vmem [shape: f32[16,128], index: 1, kind: input, shape index: {}]   ;;  %s706_s2 = inlined_call_operand.vmem [shape: f32[1,128], index: 2, kind: input, shape index: {}]   ;;  %s707_s3 = inlined_call_operand.vmem [shape: f32[128,128], index: 3, kind: input, shape index: {}]   ;;  %s708_s4 = inlined_call_operand.vmem [shape: f32[1,128], index: 4, kind: input, shape index: {}]   ;;  %s709_s5 = inlined_call_operand.vmem [shape: f32[128,4], index: 5, kind: input, shape index: {}]   ;;  %s710_s6 = inlined_call_operand.vmem [shape: f32[1,4], index: 6, kind: input, shape index: {}]   ;;  %s711_s7 = inlined_call_operand.vmem [shape: f32[8,4], index: 7, kind: output, shape index: {}]  }
   0x1   :  { %s19_s25 = sshll.u32 %s514_s24, 4  ;;  %s490_s28 = scalar_lea.hbm %s704_s0, 128  ;;  %s20_s25 = int_to_ptr.vmem [resolvable:$true] %s19_s25 }
   0x2   :  { %p491_p0 = scmp.ne.s32.totalorder %s704_s0, %s490_s28  ;;  %p494_p1 = scmp.lt.u32.totalorder %s490_s28, %s704_s0 }
   0x4   :  { %p496_p2 = pnand %p494_p1, %p491_p0 }
   0x6   :  { %499 = shalt.err (!%p496_p2)
}
   0x7   :  { %s500_s10 = scalar_lea.vmem %s20_s25, 128  ;;  %p505_p4 = scmp.lt.s32.totalorder %s20_s25, %s20_s25 }
   0x8   :  { %p501_p3 = scmp.ne.s32.totalorder %s20_s25, %s500_s10  ;;  %p506_p5 = scmp.lt.s32.totalorder %s500_s10, %s500_s10 }
   0xa   :  { %p507_p6 = por %p506_p5, %p505_p4 }
   0xc   :  { %p508_p7 = pnand %p507_p6, %p501_p3 }
   0xe   :  { %511 = shalt.err (!%p508_p7)
}
   0xf   :  { %22 = dma.hbm_to_vmem [thread:$0]  %s704_s0, 128, %s20_s25, [#allocation3]  }
  0x10   :  { %512 = dma.done.wait [#allocation3], 128  }
  0x11   :  { %513 = vsyncadd [#allocation3], 4294967168  ;;  %v515_v0 = vmov 0.0|0.0   ;;  %vm516_vm0 = vmmov 0   ;;  %v517_v1 = vmov 0.0   ;;  %v39_v2 = vld [vmem:[%s705_s1] sm:$0xff] }
  0x12   :  { %435 = vmatprep.subr.bf16.mxu0 %v515_v0  ;;  %362 = vmatprep.mubr.msk.f32.mxu0 %vm516_vm0, %v517_v1  ;;  %v40_v3 = vld [vmem:[%s705_s1 + $0x8] sm:$0xff]  ;;  %v123_v5 = vld [vmem:[%s707_s3] sm:$0xff]  ;;  %v125_v7 = vld [vmem:[%s707_s3 + $0x10] sm:$0xff]  ;;  %vm48_vm1 = vcmask 130048   ;;  %vm310_vm2 = vcmask 31744  }
  0x13   :  { %438 = vmatprep.subr.bf16.mxu1 %v515_v0  ;;  %397 = vmatprep.mubr.msk.f32.mxu1 %vm516_vm0, %v517_v1  ;;  %v436_v4 = vpack.c.bf16 %v40_v3, %v39_v2  ;;  %v124_v6 = vld [vmem:[%s707_s3 + $0x8] sm:$0xff]  ;;  %v126_v9 = vld [vmem:[%s707_s3 + $0x18] sm:$0xff]  ;;  %v38_v10 = vld [vmem:[#allocation2] sm:$0xff] }
  0x14   :  { %v439_v8 = vpack.c.bf16 %v124_v6, %v123_v5  ;;  %v442_v11 = vpack.c.bf16 %v126_v9, %v125_v7  ;;  %v127_v12 = vld [vmem:[%s707_s3 + $0x20] sm:$0xff]  ;;  %v128_v13 = vld [vmem:[%s707_s3 + $0x28] sm:$0xff]  ;;  %v129_v15 = vld [vmem:[%s707_s3 + $0x30] sm:$0xff] }
  0x15   :  { %437 = vmatpush3.bf16.msra.mxu0 %v436_v4  ;;  %v445_v14 = vpack.c.bf16 %v128_v13, %v127_v12  ;;  %v130_v16 = vld [vmem:[%s707_s3 + $0x38] sm:$0xff]  ;;  %v131_v18 = vld [vmem:[%s707_s3 + $0x40] sm:$0xff]  ;;  %v132_v19 = vld [vmem:[%s707_s3 + $0x48] sm:$0xff] }
  0x16   :  { %440 = vmatpush3.bf16.msra.mxu1 %v439_v8  ;;  %462 = vmatprep.subr.bf16.mxu0 %v515_v0  ;;  %v448_v17 = vpack.c.bf16 %v130_v16, %v129_v15  ;;  %v451_v20 = vpack.c.bf16 %v132_v19, %v131_v18  ;;  %v133_v21 = vld [vmem:[%s707_s3 + $0x50] sm:$0xff]  ;;  %v134_v22 = vld [vmem:[%s707_s3 + $0x58] sm:$0xff]  ;;  %v135_v24 = vld [vmem:[%s707_s3 + $0x60] sm:$0xff] }
  0x17   :  { %441 = vmatprep.subr.bf16.mxu1 %v515_v0  ;;  %v454_v23 = vpack.c.bf16 %v134_v22, %v133_v21  ;;  %v136_v25 = vld [vmem:[%s707_s3 + $0x68] sm:$0xff]  ;;  %v137_v27 = vld [vmem:[%s707_s3 + $0x70] sm:$0xff]  ;;  %v138_v28 = vld [vmem:[%s707_s3 + $0x78] sm:$0xff] }
  0x18   :  { %363 = vmatmul.mubr.msk.f32.vlgmr.msra.gmra.mrb[0].mxu0 %vm48_vm1, %v38_v10  ;;  %v457_v26 = vpack.c.bf16 %v136_v25, %v135_v24  ;;  %v460_v29 = vpack.c.bf16 %v138_v28, %v137_v27  ;;  %v217_v30 = vld [vmem:[%s709_s5] sm:$0xff]  ;;  %v218_v31 = vld [vmem:[%s709_s5 + $0x8] sm:$0xff]  ;;  %v219_v32 = vld [vmem:[%s709_s5 + $0x10] sm:$0xff] }
  0x19   :  { %432 = vmatprep.mubr.msk.f32.mxu0 %vm516_vm0, %v517_v1  ;;  %v463_v33 = vpack.c.bf16 %v218_v31, %v217_v30  ;;  %v220_v34 = vld [vmem:[%s709_s5 + $0x18] sm:$0xff]  ;;  %v221_v36 = vld [vmem:[%s709_s5 + $0x20] sm:$0xff]  ;;  %v222_v37 = vld [vmem:[%s709_s5 + $0x28] sm:$0xff] }
  0x1a   :  { %443 = vmatpush3.bf16.msra.mxu1 %v442_v11  ;;  %v466_v35 = vpack.c.bf16 %v220_v34, %v219_v32  ;;  %v469_v38 = vpack.c.bf16 %v222_v37, %v221_v36  ;;  %v223_v39 = vld [vmem:[%s709_s5 + $0x30] sm:$0xff]  ;;  %v224_v40 = vld [vmem:[%s709_s5 + $0x38] sm:$0xff]  ;;  %v225_v42 = vld [vmem:[%s709_s5 + $0x40] sm:$0xff] }
  0x1b   :  { %444 = vmatprep.subr.bf16.mxu1 %v515_v0  ;;  %464 = vmatpush3.bf16.msra.mxu0 %v463_v33  ;;  %v472_v41 = vpack.c.bf16 %v224_v40, %v223_v39  ;;  %v226_v43 = vld [vmem:[%s709_s5 + $0x48] sm:$0xff]  ;;  %v227_v45 = vld [vmem:[%s709_s5 + $0x50] sm:$0xff]  ;;  %v228_v46 = vld [vmem:[%s709_s5 + $0x58] sm:$0xff] }
  0x1c   :  { %465 = vmatprep.subr.bf16.mxu0 %v515_v0  ;;  %v475_v44 = vpack.c.bf16 %v226_v43, %v225_v42  ;;  %v478_v47 = vpack.c.bf16 %v228_v46, %v227_v45  ;;  %v229_v48 = vld [vmem:[%s709_s5 + $0x60] sm:$0xff]  ;;  %v230_v49 = vld [vmem:[%s709_s5 + $0x68] sm:$0xff]  ;;  %v231_v56 = vld [vmem:[%s709_s5 + $0x70] sm:$0xff] }
  0x1d   :  { %v481_v50 = vpack.c.bf16 %v230_v49, %v229_v48  ;;  %v317_v51 = vld [vmem:[%s706_s2] ss:$0 sm:$0xff]  ;;  %v232_v57 = vld [vmem:[%s709_s5 + $0x78] sm:$0xff] }
  0x1e   :  { %446 = vmatpush3.bf16.msra.mxu1 %v445_v14  ;;  %v484_v58 = vpack.c.bf16 %v232_v57, %v231_v56  ;;  %v319_v59 = vld [vmem:[%s708_s4] ss:$0 sm:$0xff] }
  0x1f   :  { %447 = vmatprep.subr.bf16.mxu1 %v515_v0  ;;  %467 = vmatpush3.bf16.msra.mxu0 %v466_v35 }
  0x20   :  { %468 = vmatprep.subr.bf16.mxu0 %v515_v0 }
  0x22   :  { %449 = vmatpush3.bf16.msra.mxu1 %v448_v17 }
  0x23   :  { %450 = vmatprep.subr.bf16.mxu1 %v515_v0  ;;  %470 = vmatpush3.bf16.msra.mxu0 %v469_v38 }
  0x24   :  { %471 = vmatprep.subr.bf16.mxu0 %v515_v0 }
  0x26   :  { %452 = vmatpush3.bf16.msra.mxu1 %v451_v20 }
  0x27   :  { %453 = vmatprep.subr.bf16.mxu1 %v515_v0  ;;  %473 = vmatpush3.bf16.msra.mxu0 %v472_v41 }
  0x28   :  { %474 = vmatprep.subr.bf16.mxu0 %v515_v0 }
  0x2a   :  { %455 = vmatpush3.bf16.msra.mxu1 %v454_v23 }
  0x2b   :  { %456 = vmatprep.subr.bf16.mxu1 %v515_v0  ;;  %476 = vmatpush3.bf16.msra.mxu0 %v475_v44 }
  0x2c   :  { %477 = vmatprep.subr.bf16.mxu0 %v515_v0 }
  0x2e   :  { %458 = vmatpush3.bf16.msra.mxu1 %v457_v26 }
  0x2f   :  { %459 = vmatprep.subr.bf16.mxu1 %v515_v0  ;;  %479 = vmatpush3.bf16.msra.mxu0 %v478_v47 }
  0x30   :  { %480 = vmatprep.subr.bf16.mxu0 %v515_v0 }
  0x32   :  { %461 = vmatpush3.bf16.msra.mxu1 %v460_v29 }
  0x33   :  { %482 = vmatpush3.bf16.msra.mxu0 %v481_v50 }
  0x34   :  { %483 = vmatprep.subr.bf16.mxu0 %v515_v0  ;;  %v320_v0 = vld [vmem:[%s710_s6] ss:$0 sm:$0xff] }
  0x37   :  { %485 = vmatpush3.bf16.msra.mxu0 %v484_v58 }
  0xeb   :  { %v118_v52 = vpop.f32.mrb[0].mxu0 }
  0xec   :  { %v119_v53 = vadd.f32 %v317_v51, %v118_v52  ;;  %v364_v54 = vpop.f32.mrb[1].mxu0 }
  0xee   :  { %v122_v55 = vmax.f32 %v119_v53, 0.0 }
  0xf0   :  { %398 = vmatmul.mubr.f32.vlgmr.msra.gmra.mrb[0].mxu1 %v122_v55 }
 0x1c3   :  { %v212_v60 = vpop.f32.mrb[0].mxu1 }
 0x1c4   :  { %v213_v61 = vadd.f32 %v319_v59, %v212_v60  ;;  %v399_v62 = vpop.f32.mrb[1].mxu1 }
 0x1c6   :  { %v216_v63 = vmax.f32 %v213_v61, 0.0 }
 0x1c8   :  { %433 = vmatmul.mubr.f32.vlgmr.msra.gmra.mrb[2].mxu0 %v216_v63 }
 0x29b   :  { %v306_v1 = vpop.f32.mrb[2].mxu0 }
 0x29c   :  { %v307_v2 = vadd.f32 %v320_v0, %v306_v1  ;;  %v434_v3 = vpop.f32.mrb[3].mxu0 }
 0x29e   :  { %311 = vst.msk [vmem:[%s711_s7] sm:$0xff] %vm310_vm2, %v307_v2 }
 0x29f   :  { %316 = vsyncpa [#allocation3], 1 }

</bundles_post_ra>
